<compile_context>
chip_gen: v7x
topology: tpu7x:2x2x1
jax: 0.10.0
libtpu: 0.0.40
codegen_flags: <defaults>
</compile_context>

<pallas_src>
import math

import jax
import jax.numpy as jnp
from jax.experimental import pallas as pl
from jax.experimental.pallas import tpu as pltpu


def _round_up(x: int, m: int) -> int:
    return (x + m - 1) // m * m


def _mlp_kernel(x_ref, w1_ref, b1_ref, w2_ref, b2_ref, o_ref):
    # Cast activations to the weight dtype (no-op for f32 weights, native-bf16
    # MXU path for bf16 weights); accumulate both matmuls in f32.
    x = x_ref[...].astype(w1_ref.dtype)
    h = jnp.dot(x, w1_ref[...], preferred_element_type=jnp.float32)
    h = jnp.maximum(h + b1_ref[...], 0.0)            # (tm, hidden) + (1, hidden)
    out = jnp.dot(h.astype(w2_ref.dtype), w2_ref[...],
                  preferred_element_type=jnp.float32)
    o_ref[...] = (out + b2_ref[...]).astype(o_ref.dtype)


def _physical_vmem_bytes() -> int:
    """Per-core VMEM capacity; conservative 64 MiB (v7x) if the query fails."""
    try:
        v = int(pltpu.get_tpu_info().vmem_capacity_bytes)
        if v >= 32 * 1024 * 1024:
            return v
    except Exception:
        pass
    return 64 * 1024 * 1024


def decoder_forward(x, w1, b1, w2, b2, *, tm=1024):
    """Apply the MLP decoder.

    Args:
      x:  (..., latent_dim) input tokens.
      w1: (latent_dim, hidden_dim)
      b1: (hidden_dim,)
      w2: (hidden_dim, output_dim)
      b2: (output_dim,)
    Returns:
      (..., output_dim)
    """
    latent_dim, hidden_dim = w1.shape
    _, output_dim = w2.shape

    orig_shape = x.shape
    x2d = x.reshape(-1, latent_dim)
    m = x2d.shape[0]

    # ---- tile selection -----------------------------------------------------
    # Row tile: multiple of the dtype's sublane tile (8 for f32, 16 for bf16).
    sublane = 8 * 4 // x.dtype.itemsize
    tm_eff = _round_up(min(tm, _round_up(m, sublane)), sublane)
    tn_eff = output_dim                       # full output width by default

    w_item = w1.dtype.itemsize
    x_item = x.dtype.itemsize

    def footprint(tm_, tn_):
        # Conservative: assumes default double-buffering of every block plus
        # f32 intermediates (h and the pre-store accumulator).
        w_bytes = (latent_dim * hidden_dim + hidden_dim
                   + hidden_dim * tn_ + tn_) * w_item
        io_bytes = tm_ * (latent_dim + tn_) * x_item
        scratch = tm_ * (hidden_dim + tn_) * 4
        return 2 * w_bytes + 2 * io_bytes + scratch

    phys_vmem = _physical_vmem_bytes()
    vmem_cap = int(phys_vmem * 0.85)          # headroom for compiler scratch

    # Shrink the row tile first, then tile the output dim, until it fits.
    while footprint(tm_eff, tn_eff) > vmem_cap and tm_eff > sublane:
        tm_eff = max(sublane, _round_up(tm_eff // 2, sublane))
    while footprint(tm_eff, tn_eff) > vmem_cap and tn_eff > 256:
        tn_eff = max(128, _round_up(tn_eff // 2, 128))
    # TODO(synk): if hidden_dim alone is too large for VMEM even at the
    # smallest tiles, a K-tiled (hidden) accumulator variant would be needed.

    grid = (pl.cdiv(m, tm_eff), pl.cdiv(output_dim, tn_eff))
    nj = grid[1]

    vmem_need = footprint(tm_eff, tn_eff)
    vmem_limit = int(min(max(2 * vmem_need, 32 * 1024 * 1024), vmem_cap))

    b1_2d = b1.reshape(1, hidden_dim)
    b2_2d = b2.reshape(1, output_dim)

    cost = pl.CostEstimate(
        flops=2 * m * (latent_dim * hidden_dim + hidden_dim * output_dim),
        transcendentals=0,
        bytes_accessed=m * (latent_dim + output_dim) * x_item
        + (latent_dim * hidden_dim + hidden_dim
           + hidden_dim * output_dim + output_dim) * w_item,
    )

    def build_and_call(single_buffer_weights):
        const_mode = pl.Buffered(1) if single_buffer_weights else None
        # w2/b2 only stay single-buffered when they are grid-constant.
        w2_mode = const_mode if nj == 1 else None

        def spec(shape, index_map, mode):
            if mode is None:
                return pl.BlockSpec(shape, index_map)
            return pl.BlockSpec(shape, index_map, pipeline_mode=mode)

        in_specs = [
            pl.BlockSpec((tm_eff, latent_dim), lambda i, j: (i, 0)),
            spec((latent_dim, hidden_dim), lambda i, j: (0, 0), const_mode),
            spec((1, hidden_dim), lambda i, j: (0, 0), const_mode),
            spec((hidden_dim, tn_eff), lambda i, j: (0, j), w2_mode),
            spec((1, tn_eff), lambda i, j: (0, j), w2_mode),
        ]
        out_spec = pl.BlockSpec((tm_eff, tn_eff), lambda i, j: (i, j))

        return pl.pallas_call(
            _mlp_kernel,
            out_shape=jax.ShapeDtypeStruct((m, output_dim), x.dtype),
            grid_spec=pltpu.PrefetchScalarGridSpec(
                num_scalar_prefetch=0,
                grid=grid,
                in_specs=in_specs,
                out_specs=out_spec,
            ),
            compiler_params=pltpu.CompilerParams(
                dimension_semantics=("parallel", "parallel"),
                vmem_limit_bytes=vmem_limit,
            ),
            cost_estimate=cost,
        )(x2d, w1, b1_2d, w2, b2_2d)

    try:
        out2d = build_and_call(True)
    except Exception:
        # pl.Buffered(1) / pipeline_mode not supported on this jax version:
        # fall back to default double-buffered weight blocks.
        out2d = build_and_call(False)

    return out2d.reshape(*orig_shape[:-1], output_dim)


def init_decoder_params(key, latent_dim, hidden_dim, output_dim, dtype=jnp.float32):
    """Deterministic init mirroring PyTorch nn.Linear default U(-1/sqrt(in), 1/sqrt(in))."""
    k1, k2, k3, k4 = jax.random.split(key, 4)
    bound1 = 1.0 / math.sqrt(latent_dim)
    bound2 = 1.0 / math.sqrt(hidden_dim)
    # Stored as (in, out) = PyTorch weight transposed.
    w1 = jax.random.uniform(k1, (latent_dim, hidden_dim), dtype, -bound1, bound1)
    b1 = jax.random.uniform(k2, (hidden_dim,), dtype, -bound1, bound1)
    w2 = jax.random.uniform(k3, (hidden_dim, output_dim), dtype, -bound2, bound2)
    b2 = jax.random.uniform(k4, (output_dim,), dtype, -bound2, bound2)
    return w1, b1, w2, b2


if __name__ == "__main__":
    # Small ViT-decoder-like shapes: batch=2, seq=8 tokens, latent=32, hidden=64, out=16.
    batch, seq = 2, 8
    latent_dim, hidden_dim, output_dim = 32, 64, 16

    key = jax.random.PRNGKey(0)
    kx, kp = jax.random.split(key)
    x = jax.random.normal(kx, (batch, seq, latent_dim), dtype=jnp.float32)
    w1, b1, w2, b2 = init_decoder_params(kp, latent_dim, hidden_dim, output_dim)

    out = decoder_forward(x, w1, b1, w2, b2)
    out = jax.block_until_ready(out)

    # Reference check in plain JAX (same math as the PyTorch module).
    ref = jnp.maximum(x @ w1 + b1, 0.0) @ w2 + b2
    assert out.shape == (batch, seq, output_dim)
    assert jnp.allclose(out, ref, atol=1e-5, rtol=1e-5)

    # Exercise a non-tile-divisible token count to check the ragged-M path
    # (no jnp.pad of x, OOB rows dropped by the pipeline).
    x_odd = jax.random.normal(kx, (3, 7, latent_dim), dtype=jnp.float32)
    out_odd = jax.block_until_ready(decoder_forward(x_odd, w1, b1, w2, b2))
    ref_odd = jnp.maximum(x_odd @ w1 + b1, 0.0) @ w2 + b2
    assert out_odd.shape == (3, 7, output_dim)
    assert jnp.allclose(out_odd, ref_odd, atol=1e-5, rtol=1e-5)

    print("KERNEL_OK")
</pallas_src>

<mosaic_0001>
module attributes {stable_mosaic.version = 11 : i64} {
  func.func @_mlp_kernel(%arg0: i32, %arg1: i32, %arg2: memref<16x32xf32, #tpu.memory_space<vmem>>, %arg3: memref<32x64xf32, #tpu.memory_space<vmem>>, %arg4: memref<1x64xf32, #tpu.memory_space<vmem>>, %arg5: memref<64x16xf32, #tpu.memory_space<vmem>>, %arg6: memref<1x16xf32, #tpu.memory_space<vmem>>, %arg7: memref<16x16xf32, #tpu.memory_space<vmem>>) attributes {dimension_semantics = [#tpu.dimension_semantics<parallel>, #tpu.dimension_semantics<parallel>], iteration_bounds = array<i64: 1, 1>, scalar_prefetch = 0 : i64, scratch_operands = 0 : i64, tpu.core_type = #tpu.core_type<tc>, window_params = [{transform_indices = @transform_0, window_bounds = array<i64: 16, 32>}, {pipeline_mode = #tpu.pipeline_mode<synchronous>, transform_indices = @transform_1, window_bounds = array<i64: 32, 64>}, {pipeline_mode = #tpu.pipeline_mode<synchronous>, transform_indices = @transform_2, window_bounds = array<i64: 1, 64>}, {pipeline_mode = #tpu.pipeline_mode<synchronous>, transform_indices = @transform_3, window_bounds = array<i64: 64, 16>}, {pipeline_mode = #tpu.pipeline_mode<synchronous>, transform_indices = @transform_4, window_bounds = array<i64: 1, 16>}, {transform_indices = @transform_5, window_bounds = array<i64: 16, 16>}]} {
    %c0 = arith.constant 0 : index
    %c0_0 = arith.constant 0 : index
    %0 = vector.load %arg2[%c0, %c0_0] : memref<16x32xf32, #tpu.memory_space<vmem>>, vector<16x32xf32>
    %c0_1 = arith.constant 0 : index
    %c0_2 = arith.constant 0 : index
    %1 = vector.load %arg3[%c0_1, %c0_2] : memref<32x64xf32, #tpu.memory_space<vmem>>, vector<32x64xf32>
    %cst = arith.constant dense<0.000000e+00> : vector<16x64xf32>
    %2 = tpu.matmul %0, %1, %cst {dimension_numbers = #tpu.dot_dimension_numbers<[1], [0], [0], [1], [0, 0, 1, 1], [], []>} : vector<16x32xf32>, vector<32x64xf32>, vector<16x64xf32> -> vector<16x64xf32>
    %c0_3 = arith.constant 0 : index
    %c0_4 = arith.constant 0 : index
    %3 = vector.load %arg4[%c0_3, %c0_4] : memref<1x64xf32, #tpu.memory_space<vmem>>, vector<1x64xf32>
    %4 = vector.broadcast %3 : vector<1x64xf32> to vector<16x64xf32>
    %5 = arith.addf %2, %4 : vector<16x64xf32>
    %cst_5 = arith.constant 0.000000e+00 : f32
    %6 = vector.broadcast %cst_5 : f32 to vector<16x64xf32>
    %7 = arith.maximumf %5, %6 : vector<16x64xf32>
    %c0_6 = arith.constant 0 : index
    %c0_7 = arith.constant 0 : index
    %8 = vector.load %arg5[%c0_6, %c0_7] : memref<64x16xf32, #tpu.memory_space<vmem>>, vector<64x16xf32>
    %cst_8 = arith.constant dense<0.000000e+00> : vector<16x16xf32>
    %9 = tpu.matmul %7, %8, %cst_8 {dimension_numbers = #tpu.dot_dimension_numbers<[1], [0], [0], [1], [0, 0, 1, 1], [], []>} : vector<16x64xf32>, vector<64x16xf32>, vector<16x16xf32> -> vector<16x16xf32>
    %c0_9 = arith.constant 0 : index
    %c0_10 = arith.constant 0 : index
    %10 = vector.load %arg6[%c0_9, %c0_10] : memref<1x16xf32, #tpu.memory_space<vmem>>, vector<1x16xf32>
    %11 = vector.broadcast %10 : vector<1x16xf32> to vector<16x16xf32>
    %12 = arith.addf %9, %11 : vector<16x16xf32>
    %c0_11 = arith.constant 0 : index
    %c0_12 = arith.constant 0 : index
    %13 = vector.load %arg7[%c0_11, %c0_12] : memref<16x16xf32, #tpu.memory_space<vmem>>, vector<16x16xf32>
    tpu.vector_store %arg7[%c0_11, %c0_12], %12 {strides = array<i32>} : memref<16x16xf32, #tpu.memory_space<vmem>>, vector<16x16xf32>,
    return
  }
  func.func @transform_0(%arg0: i32, %arg1: i32) -> (i32, i32) {
    %c0_i32 = arith.constant 0 : i32
    %c0_i32_0 = arith.constant 0 : i32
    return %arg0, %c0_i32 : i32, i32
  }
  func.func @transform_1(%arg0: i32, %arg1: i32) -> (i32, i32) {
    %c0_i32 = arith.constant 0 : i32
    %c0_i32_0 = arith.constant 0 : i32
    %c0_i32_1 = arith.constant 0 : i32
    return %c0_i32, %c0_i32_0 : i32, i32
  }
  func.func @transform_2(%arg0: i32, %arg1: i32) -> (i32, i32) {
    %c0_i32 = arith.constant 0 : i32
    %c0_i32_0 = arith.constant 0 : i32
    %c0_i32_1 = arith.constant 0 : i32
    return %c0_i32, %c0_i32_0 : i32, i32
  }
  func.func @transform_3(%arg0: i32, %arg1: i32) -> (i32, i32) {
    %c0_i32 = arith.constant 0 : i32
    %c0_i32_0 = arith.constant 0 : i32
    return %c0_i32, %arg1 : i32, i32
  }
  func.func @transform_4(%arg0: i32, %arg1: i32) -> (i32, i32) {
    %c0_i32 = arith.constant 0 : i32
    %c0_i32_0 = arith.constant 0 : i32
    return %c0_i32, %arg1 : i32, i32
  }
  func.func @transform_5(%arg0: i32, %arg1: i32) -> (i32, i32) {
    %c0_i32 = arith.constant 0 : i32
    return %arg0, %arg1 : i32, i32
  }
}

module attributes {stable_mosaic.version = 11 : i64} {
  func.func @_mlp_kernel(%arg0: i32, %arg1: i32, %arg2: memref<16x32xf32, #tpu.memory_space<vmem>>, %arg3: memref<32x64xf32, #tpu.memory_space<vmem>>, %arg4: memref<1x64xf32, #tpu.memory_space<vmem>>, %arg5: memref<64x16xf32, #tpu.memory_space<vmem>>, %arg6: memref<1x16xf32, #tpu.memory_space<vmem>>, %arg7: memref<16x16xf32, #tpu.memory_space<vmem>>) attributes {dimension_semantics = [#tpu.dimension_semantics<parallel>, #tpu.dimension_semantics<parallel>], iteration_bounds = array<i64: 1, 1>, scalar_prefetch = 0 : i64, scratch_operands = 0 : i64, tpu.core_type = #tpu.core_type<tc>, window_params = [{transform_indices = @transform_0, window_bounds = array<i64: 16, 32>}, {pipeline_mode = #tpu.pipeline_mode<synchronous>, transform_indices = @transform_1, window_bounds = array<i64: 32, 64>}, {pipeline_mode = #tpu.pipeline_mode<synchronous>, transform_indices = @transform_2, window_bounds = array<i64: 1, 64>}, {transform_indices = @transform_3, window_bounds = array<i64: 64, 16>}, {transform_indices = @transform_4, window_bounds = array<i64: 1, 16>}, {transform_indices = @transform_5, window_bounds = array<i64: 16, 16>}]} {
    %c0 = arith.constant 0 : index
    %c0_0 = arith.constant 0 : index
    %0 = vector.load %arg2[%c0, %c0_0] : memref<16x32xf32, #tpu.memory_space<vmem>>, vector<16x32xf32>
    %c0_1 = arith.constant 0 : index
    %c0_2 = arith.constant 0 : index
    %1 = vector.load %arg3[%c0_1, %c0_2] : memref<32x64xf32, #tpu.memory_space<vmem>>, vector<32x64xf32>
    %cst = arith.constant dense<0.000000e+00> : vector<16x64xf32>
    %2 = tpu.matmul %0, %1, %cst {dimension_numbers = #tpu.dot_dimension_numbers<[1], [0], [0], [1], [0, 0, 1, 1], [], []>} : vector<16x32xf32>, vector<32x64xf32>, vector<16x64xf32> -> vector<16x64xf32>
    %c0_3 = arith.constant 0 : index
    %c0_4 = arith.constant 0 : index
    %3 = vector.load %arg4[%c0_3, %c0_4] : memref<1x64xf32, #tpu.memory_space<vmem>>, vector<1x64xf32>
    %4 = vector.broadcast %3 : vector<1x64xf32> to vector<16x64xf32>
    %5 = arith.addf %2, %4 : vector<16x64xf32>
    %cst_5 = arith.constant 0.000000e+00 : f32
    %6 = vector.broadcast %cst_5 : f32 to vector<16x64xf32>
    %7 = arith.maximumf %5, %6 : vector<16x64xf32>
    %c0_6 = arith.constant 0 : index
    %c0_7 = arith.constant 0 : index
    %8 = vector.load %arg5[%c0_6, %c0_7] : memref<64x16xf32, #tpu.memory_space<vmem>>, vector<64x16xf32>
    %cst_8 = arith.constant dense<0.000000e+00> : vector<16x16xf32>
    %9 = tpu.matmul %7, %8, %cst_8 {dimension_numbers = #tpu.dot_dimension_numbers<[1], [0], [0], [1], [0, 0, 1, 1], [], []>} : vector<16x64xf32>, vector<64x16xf32>, vector<16x16xf32> -> vector<16x16xf32>
    %c0_9 = arith.constant 0 : index
    %c0_10 = arith.constant 0 : index
    %10 = vector.load %arg6[%c0_9, %c0_10] : memref<1x16xf32, #tpu.memory_space<vmem>>, vector<1x16xf32>
    %11 = vector.broadcast %10 : vector<1x16xf32> to vector<16x16xf32>
    %12 = arith.addf %9, %11 : vector<16x16xf32>
    %c0_11 = arith.constant 0 : index
    %c0_12 = arith.constant 0 : index
    %13 = vector.load %arg7[%c0_11, %c0_12] : memref<16x16xf32, #tpu.memory_space<vmem>>, vector<16x16xf32>
    tpu.vector_store %arg7[%c0_11, %c0_12], %12 {strides = array<i32>} : memref<16x16xf32, #tpu.memory_space<vmem>>, vector<16x16xf32>,
    return
  }
  func.func @transform_0(%arg0: i32, %arg1: i32) -> (i32, i32) {
    %c0_i32 = arith.constant 0 : i32
    %c0_i32_0 = arith.constant 0 : i32
    return %arg0, %c0_i32 : i32, i32
  }
  func.func @transform_1(%arg0: i32, %arg1: i32) -> (i32, i32) {
    %c0_i32 = arith.constant 0 : i32
    %c0_i32_0 = arith.constant 0 : i32
    %c0_i32_1 = arith.constant 0 : i32
    return %c0_i32, %c0_i32_0 : i32, i32
  }
  func.func @transform_2(%arg0: i32, %arg1: i32) -> (i32, i32) {
    %c0_i32 = arith.constant 0 : i32
    %c0_i32_0 = arith.constant 0 : i32
    %c0_i32_1 = arith.constant 0 : i32
    return %c0_i32, %c0_i32_0 : i32, i32
  }
  func.func @transform_3(%arg0: i32, %arg1: i32) -> (i32, i32) {
    %c0_i32 = arith.constant 0 : i32
    %c0_i32_0 = arith.constant 0 : i32
    return %c0_i32, %arg1 : i32, i32
  }
  func.func @transform_4(%arg0: i32, %arg1: i32) -> (i32, i32) {
    %c0_i32 = arith.constant 0 : i32
    %c0_i32_0 = arith.constant 0 : i32
    return %c0_i32, %arg1 : i32, i32
  }
  func.func @transform_5(%arg0: i32, %arg1: i32) -> (i32, i32) {
    %c0_i32 = arith.constant 0 : i32
    return %arg0, %arg1 : i32, i32
  }
}

</mosaic_0001>

<bundles_post_ra>
// kernel: tpu_custom_call.1
= control target key start
LH: loop header
LB: loop body
LE: loop exit
PB: predicated region body
PF: predicated region fallthrough
CT: control target
= control target key end

     0   :  { %vm34_vm0 = vcmask 261120   ;;  %s432_s0 = inlined_call_operand.vmem [shape: f32[16,32], index: 0, kind: input, shape index: {}]   ;;  %s433_s1 = inlined_call_operand.vmem [shape: f32[32,64], index: 1, kind: input, shape index: {}]   ;;  %s434_s2 = inlined_call_operand.vmem [shape: f32[1,64], index: 2, kind: input, shape index: {}]   ;;  %s435_s3 = inlined_call_operand.vmem [shape: f32[64,16], index: 3, kind: input, shape index: {}]   ;;  %s436_s4 = inlined_call_operand.vmem [shape: f32[1,16], index: 4, kind: input, shape index: {}]   ;;  %s437_s5 = inlined_call_operand.hbm [shape: f32[16,16], index: 5, kind: output, shape index: {}]  }
   0x1   :  { %v23_v0 = vld [vmem:[%s433_s1] sm:$0xff]  ;;  %v24_v1 = vld [vmem:[%s433_s1 + $0x8] sm:$0xff]  ;;  %v25_v2 = vld [vmem:[%s433_s1 + $0x10] sm:$0xff] }
   0x2   :  { %v286_v3 = vpack.c.bf16 %v24_v1, %v23_v0  ;;  %v26_v4 = vld [vmem:[%s433_s1 + $0x18] sm:$0xff]  ;;  %v21_v5 = vld [vmem:[%s432_s0] sm:$0xff]  ;;  %v119_v8 = vld [vmem:[%s435_s3 + $0x8] sm:$0xff] }
   0x3   :  { %v290_v6 = vpack.c.bf16 %v26_v4, %v25_v2  ;;  %264 = vmatprep.mubr.msk.f32.mxu0 %vm34_vm0, %v21_v5  ;;  %v118_v7 = vld [vmem:[%s435_s3] sm:$0xff]  ;;  %v120_v9 = vld [vmem:[%s435_s3 + $0x10] sm:$0xff]  ;;  %v121_v11 = vld [vmem:[%s435_s3 + $0x18] sm:$0xff] }
   0x4   :  { %287 = vmatprep.subr.bf16.mxu0 %v286_v3  ;;  %v294_v10 = vpack.c.bf16 %v119_v8, %v118_v7  ;;  %v298_v12 = vpack.c.bf16 %v121_v11, %v120_v9  ;;  %v122_v13 = vld [vmem:[%s435_s3 + $0x20] sm:$0xff]  ;;  %v123_v14 = vld [vmem:[%s435_s3 + $0x28] sm:$0xff] }
   0x5   :  { %289 = vmatpush3.bf16.msra.mxu0 %v286_v3 }
   0x6   :  { %10 = vsyncpa [#allocation3], 0  ;;  %291 = vmatprep.subr.bf16.mxu0 %v290_v6  ;;  %295 = vmatprep.subr.bf16.mxu1 %v294_v10  ;;  %v302_v15 = vpack.c.bf16 %v123_v14, %v122_v13  ;;  %v22_v16 = vld [vmem:[%s432_s0 + $0x8] sm:$0xff]  ;;  %v124_v17 = vld [vmem:[%s435_s3 + $0x30] sm:$0xff]  ;;  %vm133_vm1 = vcmask 523264   ;;  %vm215_vm2 = vcmask 130048  }
   0x7   :  { %297 = vmatpush3.bf16.msra.mxu1 %v294_v10  ;;  %v125_v18 = vld [vmem:[%s435_s3 + $0x38] sm:$0xff]  ;;  %v234_v20 = vld [vmem:[%s434_s2] ss:$0 sm:$0xff]  ;;  %s337_s3 = smov [#allocation2]  }
   0x8   :  { %299 = vmatprep.subr.bf16.mxu1 %v298_v12  ;;  %v306_v19 = vpack.c.bf16 %v125_v18, %v124_v17  ;;  %v237_v27 = vld [vmem:[%s436_s4] ss:$0 sm:$0xff]  ;;  %s223_s23 = sshll.u32 %s337_s3, 4  ;;  %s224_s23 = int_to_ptr.vmem [resolvable:$true] %s223_s23 }
   0x9   :  { %293 = vmatpush3.bf16.msra.mxu0 %v290_v6  ;;  %s313_s2 = scalar_lea.vmem %s224_s23, 256  ;;  %p318_p1 = scmp.lt.s32.totalorder %s224_s23, %s224_s23 }
   0xa   :  { %p314_p0 = scmp.ne.s32.totalorder %s224_s23, %s313_s2  ;;  %p319_p2 = scmp.lt.s32.totalorder %s313_s2, %s313_s2 }
   0xb   :  { %301 = vmatpush3.bf16.msra.mxu1 %v298_v12 }
   0xc   :  { %265 = vmatmul.mubr.msk.f32.vlgmr.msra.gmra.mrb[0].mxu0 %vm34_vm0, %v22_v16  ;;  %303 = vmatprep.subr.bf16.mxu1 %v302_v15  ;;  %p320_p3 = por %p319_p2, %p318_p1 }
   0xe   :  { %p321_p4 = pnand %p320_p3, %p314_p0 }
   0xf   :  { %305 = vmatpush3.bf16.msra.mxu1 %v302_v15 }
  0x10   :  { %307 = vmatprep.subr.bf16.mxu1 %v306_v19 }
  0x13   :  { %309 = vmatpush3.bf16.msra.mxu1 %v306_v19 }
  0xdf   :  { %v266_v21 = vpop.f32.mrb[0].mxu0 }
  0xe0   :  { %v113_v22 = vadd.f32 %v266_v21, %v234_v20  ;;  %v107_v23 = vpop.f32.mrb[1].mxu0 }
  0xe1   :  { %v108_v24 = vadd.f32 %v234_v20, %v107_v23 }
  0xe2   :  { %v117_v26 = vmax.f32 %v113_v22, 0.0 }
  0xe3   :  { %v116_v25 = vmax.f32 %v108_v24, 0.0 }
  0xe5   :  { %283 = vmatprep.mubr.msk.f32.mxu1 %vm133_vm1, %v116_v25 }
  0xe6   :  { %284 = vmatmul.mubr.msk.f32.vlgmr.msra.gmra.mrb[0].mxu1 %vm133_vm1, %v117_v26 }
 0x1b9   :  { %v285_v28 = vpop.f32.mrb[0].mxu1 }
 0x1ba   :  { %v212_v29 = vadd.f32 %v285_v28, %v237_v27  ;;  %v206_v30 = vpop.f32.mrb[1].mxu1 }
 0x1bb   :  { %v207_v31 = vadd.f32 %v237_v27, %v206_v30 }
 0x1bc   :  { %217 = vst.msk [vmem:[#allocation2 + $0x8] sm:$0xff] %vm215_vm2, %v212_v29 }
 0x1bd   :  { %216 = vst.msk [vmem:[#allocation2] sm:$0xff] %vm215_vm2, %v207_v31 }
 0x1be   :  { %324 = shalt.err (!%p321_p4)
}
 0x1bf   :  { %s325_s4 = scalar_lea.hbm %s437_s5, 256 }
 0x1c0   :  { %p326_p5 = scmp.ne.s32.totalorder %s437_s5, %s325_s4  ;;  %p329_p6 = scmp.lt.u32.totalorder %s325_s4, %s437_s5 }
 0x1c2   :  { %p331_p7 = pnand %p329_p6, %p326_p5 }
 0x1c4   :  { %334 = shalt.err (!%p331_p7)
}
 0x1c5   :  { %s338_s30 = smov 128   ;;  %s339_s6 = smov 8  }
 0x1c6   :  { %229 = dma.vmem_to_hbm [thread:$0]  %s224_s23, 256, %s437_s5, [#allocation3], %s338_s30, %s338_s30, %s339_s6  }
 0x1c7   :  { %335 = dma.done.wait [#allocation3], 256  }
 0x1c8   :  { %336 = vsyncadd [#allocation3], 4294967040 }
 0x1c9   :  { %233 = vsyncpa [#allocation3], 1 }

// kernel: tpu_custom_call.1
= control target key start
LH: loop header
LB: loop body
LE: loop exit
PB: predicated region body
PF: predicated region fallthrough
CT: control target
= control target key end

     0   :  { %vm34_vm0 = vcmask 261120   ;;  %s432_s0 = inlined_call_operand.vmem [shape: f32[16,32], index: 0, kind: input, shape index: {}]   ;;  %s433_s1 = inlined_call_operand.vmem [shape: f32[32,64], index: 1, kind: input, shape index: {}]   ;;  %s434_s2 = inlined_call_operand.vmem [shape: f32[1,64], index: 2, kind: input, shape index: {}]   ;;  %s435_s3 = inlined_call_operand.vmem [shape: f32[64,16], index: 3, kind: input, shape index: {}]   ;;  %s436_s4 = inlined_call_operand.vmem [shape: f32[1,16], index: 4, kind: input, shape index: {}]   ;;  %s437_s5 = inlined_call_operand.hbm [shape: f32[16,16], index: 5, kind: output, shape index: {}]  }
   0x1   :  { %v23_v0 = vld [vmem:[%s433_s1] sm:$0xff]  ;;  %v24_v1 = vld [vmem:[%s433_s1 + $0x8] sm:$0xff]  ;;  %v25_v2 = vld [vmem:[%s433_s1 + $0x10] sm:$0xff] }
   0x2   :  { %v286_v3 = vpack.c.bf16 %v24_v1, %v23_v0  ;;  %v26_v4 = vld [vmem:[%s433_s1 + $0x18] sm:$0xff]  ;;  %v21_v5 = vld [vmem:[%s432_s0] sm:$0xff]  ;;  %v119_v8 = vld [vmem:[%s435_s3 + $0x8] sm:$0xff] }
   0x3   :  { %v290_v6 = vpack.c.bf16 %v26_v4, %v25_v2  ;;  %264 = vmatprep.mubr.msk.f32.mxu0 %vm34_vm0, %v21_v5  ;;  %v118_v7 = vld [vmem:[%s435_s3] sm:$0xff]  ;;  %v120_v9 = vld [vmem:[%s435_s3 + $0x10] sm:$0xff]  ;;  %v121_v11 = vld [vmem:[%s435_s3 + $0x18] sm:$0xff] }
   0x4   :  { %287 = vmatprep.subr.bf16.mxu0 %v286_v3  ;;  %v294_v10 = vpack.c.bf16 %v119_v8, %v118_v7  ;;  %v298_v12 = vpack.c.bf16 %v121_v11, %v120_v9  ;;  %v122_v13 = vld [vmem:[%s435_s3 + $0x20] sm:$0xff]  ;;  %v123_v14 = vld [vmem:[%s435_s3 + $0x28] sm:$0xff] }
   0x5   :  { %289 = vmatpush3.bf16.msra.mxu0 %v286_v3 }
   0x6   :  { %10 = vsyncpa [#allocation3], 0  ;;  %291 = vmatprep.subr.bf16.mxu0 %v290_v6  ;;  %295 = vmatprep.subr.bf16.mxu1 %v294_v10  ;;  %v302_v15 = vpack.c.bf16 %v123_v14, %v122_v13  ;;  %v22_v16 = vld [vmem:[%s432_s0 + $0x8] sm:$0xff]  ;;  %v124_v17 = vld [vmem:[%s435_s3 + $0x30] sm:$0xff]  ;;  %vm133_vm1 = vcmask 523264   ;;  %vm215_vm2 = vcmask 130048  }
   0x7   :  { %297 = vmatpush3.bf16.msra.mxu1 %v294_v10  ;;  %v125_v18 = vld [vmem:[%s435_s3 + $0x38] sm:$0xff]  ;;  %v234_v20 = vld [vmem:[%s434_s2] ss:$0 sm:$0xff]  ;;  %s337_s3 = smov [#allocation2]  }
   0x8   :  { %299 = vmatprep.subr.bf16.mxu1 %v298_v12  ;;  %v306_v19 = vpack.c.bf16 %v125_v18, %v124_v17  ;;  %v237_v27 = vld [vmem:[%s436_s4] ss:$0 sm:$0xff]  ;;  %s223_s23 = sshll.u32 %s337_s3, 4  ;;  %s224_s23 = int_to_ptr.vmem [resolvable:$true] %s223_s23 }
   0x9   :  { %293 = vmatpush3.bf16.msra.mxu0 %v290_v6  ;;  %s313_s2 = scalar_lea.vmem %s224_s23, 256  ;;  %p318_p1 = scmp.lt.s32.totalorder %s224_s23, %s224_s23 }
   0xa   :  { %p314_p0 = scmp.ne.s32.totalorder %s224_s23, %s313_s2  ;;  %p319_p2 = scmp.lt.s32.totalorder %s313_s2, %s313_s2 }
   0xb   :  { %301 = vmatpush3.bf16.msra.mxu1 %v298_v12 }
   0xc   :  { %265 = vmatmul.mubr.msk.f32.vlgmr.msra.gmra.mrb[0].mxu0 %vm34_vm0, %v22_v16  ;;  %303 = vmatprep.subr.bf16.mxu1 %v302_v15  ;;  %p320_p3 = por %p319_p2, %p318_p1 }
   0xe   :  { %p321_p4 = pnand %p320_p3, %p314_p0 }
   0xf   :  { %305 = vmatpush3.bf16.msra.mxu1 %v302_v15 }
  0x10   :  { %307 = vmatprep.subr.bf16.mxu1 %v306_v19 }
  0x13   :  { %309 = vmatpush3.bf16.msra.mxu1 %v306_v19 }
  0xdf   :  { %v266_v21 = vpop.f32.mrb[0].mxu0 }
  0xe0   :  { %v113_v22 = vadd.f32 %v266_v21, %v234_v20  ;;  %v107_v23 = vpop.f32.mrb[1].mxu0 }
  0xe1   :  { %v108_v24 = vadd.f32 %v234_v20, %v107_v23 }
  0xe2   :  { %v117_v26 = vmax.f32 %v113_v22, 0.0 }
  0xe3   :  { %v116_v25 = vmax.f32 %v108_v24, 0.0 }
  0xe5   :  { %283 = vmatprep.mubr.msk.f32.mxu1 %vm133_vm1, %v116_v25 }
  0xe6   :  { %284 = vmatmul.mubr.msk.f32.vlgmr.msra.gmra.mrb[0].mxu1 %vm133_vm1, %v117_v26 }
 0x1b9   :  { %v285_v28 = vpop.f32.mrb[0].mxu1 }
 0x1ba   :  { %v212_v29 = vadd.f32 %v285_v28, %v237_v27  ;;  %v206_v30 = vpop.f32.mrb[1].mxu1 }
 0x1bb   :  { %v207_v31 = vadd.f32 %v237_v27, %v206_v30 }
 0x1bc   :  { %217 = vst.msk [vmem:[#allocation2 + $0x8] sm:$0xff] %vm215_vm2, %v212_v29 }
 0x1bd   :  { %216 = vst.msk [vmem:[#allocation2] sm:$0xff] %vm215_vm2, %v207_v31 }
 0x1be   :  { %324 = shalt.err (!%p321_p4)
}
 0x1bf   :  { %s325_s4 = scalar_lea.hbm %s437_s5, 256 }
 0x1c0   :  { %p326_p5 = scmp.ne.s32.totalorder %s437_s5, %s325_s4  ;;  %p329_p6 = scmp.lt.u32.totalorder %s325_s4, %s437_s5 }
 0x1c2   :  { %p331_p7 = pnand %p329_p6, %p326_p5 }
 0x1c4   :  { %334 = shalt.err (!%p331_p7)
}
 0x1c5   :  { %s338_s30 = smov 128   ;;  %s339_s6 = smov 8  }
 0x1c6   :  { %229 = dma.vmem_to_hbm [thread:$0]  %s224_s23, 256, %s437_s5, [#allocation3], %s338_s30, %s338_s30, %s339_s6  }
 0x1c7   :  { %335 = dma.done.wait [#allocation3], 256  }
 0x1c8   :  { %336 = vsyncadd [#allocation3], 4294967040 }
 0x1c9   :  { %233 = vsyncpa [#allocation3], 1 }

</bundles_post_ra>
